<compile_context>
chip_gen: v5e
topology: v5e:2x2
jax: 0.10.0
libtpu: 0.0.40
codegen_flags: <defaults>
</compile_context>

<pallas_src>
import functools
import math

import numpy as np

import jax
import jax.numpy as jnp
from jax.experimental import pallas as pl
from jax.experimental.pallas import tpu as pltpu

NUM_HEADS = 4


def _round_up(x, m):
    return ((x + m - 1) // m) * m


def _cdiv(a, b):
    return (a + b - 1) // b


def _neighbor_attn_kernel(hv_ref, he_ref, mask_ref,
                          wq_ref, wkv_ref, rlog_ref, dblk_ref, rexp_ref, wo_ref,
                          out_ref, *, num_heads, kh, compute_dtype, approx):
    f32 = jnp.float32
    cdt = compute_dtype

    hv = hv_ref[...]                               # [TN, H]         (cdt)
    he = he_ref[...]                               # [TN, K*C_in]    (cdt)
    mask = mask_ref[...]                           # [TN, K]         (f32)
    # Replicate the mask across heads in-kernel (cheap lane work) instead of
    # shipping a num_heads-tiled copy through HBM.
    mask_t = jnp.concatenate([mask] * num_heads, axis=-1)   # [TN, nh*K]

    # Projections.  Q uses the K-tiled, pre-scaled weight (one MXU output
    # block); K/V share a single fused block-diagonal weight so h_E goes
    # through the MXU once.
    q_t = jnp.dot(hv, wq_ref[...], preferred_element_type=f32)    # [TN, K*H]
    kv = jnp.dot(he, wkv_ref[...], preferred_element_type=f32)    # [TN, 2*K*H]
    kp = kv[:, :kh]                                                # [TN, K*H]
    vp = kv[:, kh:]                                                # [TN, K*H]

    # Per-head logits: the d-sum runs on the MXU via a 0/1 reduction matrix
    # (scale already folded into W_Q).
    logits = jnp.dot((q_t * kp).astype(cdt), rlog_ref[...],
                     preferred_element_type=f32)                   # [TN, nh*K]

    # Numerically-stable masked softmax over K per head.  Masked logits are
    # pushed to a large-negative (finite) value so the shift uses the masked
    # max; fully-masked rows stay finite and produce exactly-zero attention.
    logits = jnp.where(mask_t > 0.0, logits, jnp.float32(-1e30))
    m = jnp.max(logits, axis=-1, keepdims=True)                    # [TN, 1]
    e = jnp.exp(logits - m) * mask_t                               # [TN, nh*K]
    denom = jnp.dot(e.astype(cdt), dblk_ref[...],
                    preferred_element_type=f32)                    # per-head sums, tiled
    attend = e * pl.reciprocal(jnp.maximum(denom, jnp.float32(1e-30)),
                               approx=approx)                      # [TN, nh*K]

    # Value aggregation: expand attend to the [K*H] layout on the MXU,
    # multiply by V, then the K-sum and W_O are folded into one matmul.
    w = jnp.dot(attend.astype(cdt), rexp_ref[...],
                preferred_element_type=f32) * vp                   # [TN, K*H]
    out = jnp.dot(w.astype(cdt), wo_ref[...], preferred_element_type=f32)
    out_ref[...] = out.astype(out_ref.dtype)


def _build_constants(wq_t, wk_t, wv_t, wo_t, K, num_heads, compute_dtype):
    """Host-side constant matrices (built once per call, tiny)."""
    H = wq_t.shape[0]                     # num_hidden
    d = H // num_heads
    scale = 1.0 / math.sqrt(d)            # fold 1/sqrt(d) into W_Q

    # Q tiled across neighbors (pre-scaled): [H, K*H]
    wq_tiled = jnp.tile(wq_t * scale, (1, K)).astype(compute_dtype)
    # Fused block-diagonal K/V projection: [K*C_in, 2*K*H]
    eye_k = jnp.eye(K, dtype=wk_t.dtype)
    w_kv = jnp.concatenate([jnp.kron(eye_k, wk_t), jnp.kron(eye_k, wv_t)],
                           axis=1).astype(compute_dtype)
    # W_O folded with the K-sum: [K*H, H]
    wo_fold = jnp.tile(wo_t, (K, 1)).astype(compute_dtype)

    # Pure 0/1 d-sum reduction: [K*H, nh*K], r_log[k*H + h*d + j, h*K + k] = 1
    r_log = np.zeros((K * H, num_heads * K), np.float32)
    for k in range(K):
        for h in range(num_heads):
            r_log[k * H + h * d:k * H + (h + 1) * d, h * K + k] = 1.0
    # Expand attend [nh*K] -> aligned [K*H]: transpose of the same pattern.
    r_exp = r_log.T.copy()                                         # [nh*K, K*H]
    # Per-head softmax denominator (tiled back across K): [nh*K, nh*K]
    d_blk = np.kron(np.eye(num_heads, dtype=np.float32),
                    np.ones((K, K), np.float32))

    return (wq_tiled, w_kv,
            jnp.asarray(r_log, dtype=compute_dtype),
            jnp.asarray(d_blk, dtype=compute_dtype),
            jnp.asarray(r_exp, dtype=compute_dtype),
            wo_fold)


def neighbor_attention(h_V, h_E, mask_attend, wq_t, wk_t, wv_t, wo_t,
                       num_heads=NUM_HEADS, tile_nodes=512, use_bf16=True):
    """h_V: [B, N, H]; h_E: [B, N, K, C_in]; mask_attend: [B, N, K]."""
    B, N, H = h_V.shape
    K, C_in = h_E.shape[2], h_E.shape[3]
    BN = B * N
    cdt = jnp.bfloat16 if use_bf16 else jnp.float32

    # Large node tiles amortize grid-step overhead; prefer >=2 grid steps so
    # both v7x TensorCores get work under "parallel".  No host-side padding:
    # the boundary block is clipped by Pallas and rows are independent.
    tile = min(int(tile_nodes), _round_up(BN, 8))
    if _cdiv(BN, tile) < 2 and BN > 8:
        tile = _round_up(_cdiv(BN, 2), 8)
    grid = (_cdiv(BN, tile),)

    hv_f = h_V.reshape(BN, H).astype(cdt)
    he_f = h_E.reshape(BN, K * C_in).astype(cdt)          # lane-dense packing
    mask_f = mask_attend.reshape(BN, K).astype(jnp.float32)

    (wq_tiled, w_kv, r_log, d_blk, r_exp, wo_fold) = _build_constants(
        wq_t, wk_t, wv_t, wo_t, K, num_heads, cdt)

    kernel = functools.partial(
        _neighbor_attn_kernel, num_heads=num_heads, kh=K * H,
        compute_dtype=cdt, approx=use_bf16)

    out = pl.pallas_call(
        kernel,
        out_shape=jax.ShapeDtypeStruct((BN, H), jnp.float32),
        grid_spec=pltpu.PrefetchScalarGridSpec(
            num_scalar_prefetch=0,
            grid=grid,
            in_specs=[
                pl.BlockSpec((tile, H), lambda i: (i, 0)),
                pl.BlockSpec((tile, K * C_in), lambda i: (i, 0)),
                pl.BlockSpec((tile, K), lambda i: (i, 0)),
                pl.BlockSpec((H, K * H), lambda i: (0, 0)),
                pl.BlockSpec((K * C_in, 2 * K * H), lambda i: (0, 0)),
                pl.BlockSpec((K * H, num_heads * K), lambda i: (0, 0)),
                pl.BlockSpec((num_heads * K, num_heads * K), lambda i: (0, 0)),
                pl.BlockSpec((num_heads * K, K * H), lambda i: (0, 0)),
                pl.BlockSpec((K * H, H), lambda i: (0, 0)),
            ],
            out_specs=pl.BlockSpec((tile, H), lambda i: (i, 0)),
        ),
        compiler_params=pltpu.CompilerParams(
            dimension_semantics=("parallel",),
            vmem_limit_bytes=48 * 1024 * 1024),
    )(hv_f, he_f, mask_f, wq_tiled, w_kv, r_log, d_blk, r_exp, wo_fold)

    return out.reshape(B, N, H)


def neighbor_attention_ref(h_V, h_E, mask_attend, wq_t, wk_t, wv_t, wo_t,
                           num_heads=NUM_HEADS):
    """Pure-JAX reference mirroring the PyTorch forward."""
    B, N, H = h_V.shape
    K = h_E.shape[2]
    d = H // num_heads
    Q = h_V @ wq_t                                    # [B,N,H]
    Kp = (h_E @ wk_t).reshape(B, N, K, num_heads, d)  # [B,N,K,nh,d]
    Vp = (h_E @ wv_t).reshape(B, N, K, num_heads, d)
    Qr = Q.reshape(B, N, 1, num_heads, d)
    logits = jnp.sum(Qr * Kp, axis=-1) / jnp.sqrt(jnp.float32(d))  # [B,N,K,nh]
    logits = jnp.transpose(logits, (0, 1, 3, 2))                   # [B,N,nh,K]
    m = mask_attend[:, :, None, :].astype(jnp.float32)
    logits = jnp.where(m > 0, logits, jnp.finfo(jnp.float32).min)
    attend = jax.nn.softmax(logits, axis=-1) * m
    Vt = jnp.transpose(Vp, (0, 1, 3, 2, 4))                        # [B,N,nh,K,d]
    upd = jnp.einsum('bnhk,bnhkd->bnhd', attend, Vt).reshape(B, N, H)
    return upd @ wo_t


if __name__ == "__main__":
    B, N, K = 2, 16, 8
    num_in, num_hidden = 16, 32

    key = jax.random.PRNGKey(0)
    k1, k2, k3, k4, k5, k6, k7 = jax.random.split(key, 7)

    h_V = jax.random.normal(k1, (B, N, num_hidden), dtype=jnp.float32)
    h_E = jax.random.normal(k2, (B, N, K, num_in), dtype=jnp.float32)
    mask_attend = (jax.random.uniform(k3, (B, N, K)) > 0.3).astype(jnp.float32)

    # nn.Linear weights are [out, in]; we store the transposed [in, out] form.
    scale_h = 1.0 / jnp.sqrt(jnp.float32(num_hidden))
    scale_in = 1.0 / jnp.sqrt(jnp.float32(num_in))
    wq_t = jax.random.normal(k4, (num_hidden, num_hidden), jnp.float32) * scale_h
    wk_t = jax.random.normal(k5, (num_in, num_hidden), jnp.float32) * scale_in
    wv_t = jax.random.normal(k6, (num_in, num_hidden), jnp.float32) * scale_in
    wo_t = jax.random.normal(k7, (num_hidden, num_hidden), jnp.float32) * scale_h

    ref = neighbor_attention_ref(h_V, h_E, mask_attend, wq_t, wk_t, wv_t, wo_t)

    # Exact f32 path: tight check against the PyTorch-equivalent reference.
    out_f32 = jax.block_until_ready(
        neighbor_attention(h_V, h_E, mask_attend, wq_t, wk_t, wv_t, wo_t,
                           use_bf16=False))
    assert out_f32.shape == (B, N, num_hidden)
    assert jnp.allclose(out_f32, ref, atol=1e-4, rtol=1e-4), \
        "f32 path mismatch vs reference"

    # Fast path (bf16 MXU operands, f32 accumulation): loose-tolerance check.
    out_bf16 = jax.block_until_ready(
        neighbor_attention(h_V, h_E, mask_attend, wq_t, wk_t, wv_t, wo_t,
                           use_bf16=True))
    max_abs = float(jnp.max(jnp.abs(out_bf16 - ref)))
    rel_l2 = float(jnp.linalg.norm(out_bf16 - ref) / jnp.linalg.norm(ref))
    assert max_abs < 0.25 and rel_l2 < 0.08, \
        f"bf16 path mismatch vs reference (max_abs={max_abs}, rel_l2={rel_l2})"

    print("KERNEL_OK")
</pallas_src>

<mosaic_0001>
module attributes {stable_mosaic.version = 11 : i64} {
  func.func @_neighbor_attn_kernel(%arg0: i32, %arg1: memref<16x32xf32, #tpu.memory_space<vmem>>, %arg2: memref<16x128xf32, #tpu.memory_space<vmem>>, %arg3: memref<16x8xf32, #tpu.memory_space<vmem>>, %arg4: memref<32x256xf32, #tpu.memory_space<vmem>>, %arg5: memref<128x512xf32, #tpu.memory_space<vmem>>, %arg6: memref<256x32xf32, #tpu.memory_space<vmem>>, %arg7: memref<32x32xf32, #tpu.memory_space<vmem>>, %arg8: memref<32x256xf32, #tpu.memory_space<vmem>>, %arg9: memref<256x32xf32, #tpu.memory_space<vmem>>, %arg10: memref<16x32xf32, #tpu.memory_space<vmem>>) attributes {dimension_semantics = [#tpu.dimension_semantics<parallel>], iteration_bounds = array<i64: 2>, scalar_prefetch = 0 : i64, scratch_operands = 0 : i64, tpu.core_type = #tpu.core_type<tc>, window_params = [{transform_indices = @transform_0, window_bounds = array<i64: 16, 32>}, {transform_indices = @transform_1, window_bounds = array<i64: 16, 128>}, {transform_indices = @transform_2, window_bounds = array<i64: 16, 8>}, {pipeline_mode = #tpu.pipeline_mode<synchronous>, transform_indices = @transform_3, window_bounds = array<i64: 32, 256>}, {pipeline_mode = #tpu.pipeline_mode<synchronous>, transform_indices = @transform_4, window_bounds = array<i64: 128, 512>}, {pipeline_mode = #tpu.pipeline_mode<synchronous>, transform_indices = @transform_5, window_bounds = array<i64: 256, 32>}, {pipeline_mode = #tpu.pipeline_mode<synchronous>, transform_indices = @transform_6, window_bounds = array<i64: 32, 32>}, {pipeline_mode = #tpu.pipeline_mode<synchronous>, transform_indices = @transform_7, window_bounds = array<i64: 32, 256>}, {pipeline_mode = #tpu.pipeline_mode<synchronous>, transform_indices = @transform_8, window_bounds = array<i64: 256, 32>}, {transform_indices = @transform_9, window_bounds = array<i64: 16, 32>}]} {
    %c0 = arith.constant 0 : index
    %c0_0 = arith.constant 0 : index
    %0 = vector.load %arg1[%c0, %c0_0] : memref<16x32xf32, #tpu.memory_space<vmem>>, vector<16x32xf32>
    %c0_1 = arith.constant 0 : index
    %c0_2 = arith.constant 0 : index
    %1 = vector.load %arg2[%c0_1, %c0_2] : memref<16x128xf32, #tpu.memory_space<vmem>>, vector<16x128xf32>
    %c0_3 = arith.constant 0 : index
    %c0_4 = arith.constant 0 : index
    %2 = vector.load %arg3[%c0_3, %c0_4] : memref<16x8xf32, #tpu.memory_space<vmem>>, vector<16x8xf32>
    %3 = tpu.concatenate %2, %2, %2, %2 in 1 : vector<16x8xf32>, vector<16x8xf32>, vector<16x8xf32>, vector<16x8xf32> -> vector<16x32xf32>
    %c0_5 = arith.constant 0 : index
    %c0_6 = arith.constant 0 : index
    %4 = vector.load %arg4[%c0_5, %c0_6] : memref<32x256xf32, #tpu.memory_space<vmem>>, vector<32x256xf32>
    %cst = arith.constant dense<0.000000e+00> : vector<16x256xf32>
    %5 = tpu.matmul %0, %4, %cst {dimension_numbers = #tpu.dot_dimension_numbers<[1], [0], [0], [1], [0, 0, 1, 1], [], []>} : vector<16x32xf32>, vector<32x256xf32>, vector<16x256xf32> -> vector<16x256xf32>
    %c0_7 = arith.constant 0 : index
    %c0_8 = arith.constant 0 : index
    %6 = vector.load %arg5[%c0_7, %c0_8] : memref<128x512xf32, #tpu.memory_space<vmem>>, vector<128x512xf32>
    %cst_9 = arith.constant dense<0.000000e+00> : vector<16x512xf32>
    %7 = tpu.matmul %1, %6, %cst_9 {dimension_numbers = #tpu.dot_dimension_numbers<[1], [0], [0], [1], [0, 0, 1, 1], [], []>} : vector<16x128xf32>, vector<128x512xf32>, vector<16x512xf32> -> vector<16x512xf32>
    %8 = vector.extract_strided_slice %7 {offsets = [0, 0], sizes = [16, 256], strides = [1, 1]} : vector<16x512xf32> to vector<16x256xf32>
    %9 = vector.extract_strided_slice %7 {offsets = [0, 256], sizes = [16, 256], strides = [1, 1]} : vector<16x512xf32> to vector<16x256xf32>
    %10 = arith.mulf %5, %8 : vector<16x256xf32>
    %c0_10 = arith.constant 0 : index
    %c0_11 = arith.constant 0 : index
    %11 = vector.load %arg6[%c0_10, %c0_11] : memref<256x32xf32, #tpu.memory_space<vmem>>, vector<256x32xf32>
    %cst_12 = arith.constant dense<0.000000e+00> : vector<16x32xf32>
    %12 = tpu.matmul %10, %11, %cst_12 {dimension_numbers = #tpu.dot_dimension_numbers<[1], [0], [0], [1], [0, 0, 1, 1], [], []>} : vector<16x256xf32>, vector<256x32xf32>, vector<16x32xf32> -> vector<16x32xf32>
    %cst_13 = arith.constant 0.000000e+00 : f32
    %13 = vector.broadcast %cst_13 : f32 to vector<16x32xf32>
    %14 = arith.cmpf ogt, %3, %13 : vector<16x32xf32>
    %cst_14 = arith.constant -1.000000e+30 : f32
    %15 = vector.broadcast %cst_14 : f32 to vector<16x32xf32>
    %16 = arith.select %14, %12, %15 : vector<16x32xi1>, vector<16x32xf32>
    %cst_15 = arith.constant dense<0xFF800000> : vector<16xf32>
    %17 = vector.multi_reduction <maximumf>, %16, %cst_15 [1] : vector<16x32xf32> to vector<16xf32>
    %18 = vector.shape_cast %17 : vector<16xf32> to vector<16x1xf32>
    %19 = vector.broadcast %18 : vector<16x1xf32> to vector<16x32xf32>
    %20 = arith.subf %16, %19 : vector<16x32xf32>
    %21 = math.exp %20 : vector<16x32xf32>
    %22 = arith.mulf %21, %3 : vector<16x32xf32>
    %c0_16 = arith.constant 0 : index
    %c0_17 = arith.constant 0 : index
    %23 = vector.load %arg7[%c0_16, %c0_17] : memref<32x32xf32, #tpu.memory_space<vmem>>, vector<32x32xf32>
    %cst_18 = arith.constant dense<0.000000e+00> : vector<16x32xf32>
    %24 = tpu.matmul %22, %23, %cst_18 {dimension_numbers = #tpu.dot_dimension_numbers<[1], [0], [0], [1], [0, 0, 1, 1], [], []>} : vector<16x32xf32>, vector<32x32xf32>, vector<16x32xf32> -> vector<16x32xf32>
    %cst_19 = arith.constant 1.000000e-30 : f32
    %25 = vector.broadcast %cst_19 : f32 to vector<16x32xf32>
    %26 = arith.maximumf %24, %25 : vector<16x32xf32>
    %27 = tpu.reciprocal %26 : vector<16x32xf32> -> vector<16x32xf32>
    %28 = arith.mulf %22, %27 : vector<16x32xf32>
    %c0_20 = arith.constant 0 : index
    %c0_21 = arith.constant 0 : index
    %29 = vector.load %arg8[%c0_20, %c0_21] : memref<32x256xf32, #tpu.memory_space<vmem>>, vector<32x256xf32>
    %cst_22 = arith.constant dense<0.000000e+00> : vector<16x256xf32>
    %30 = tpu.matmul %28, %29, %cst_22 {dimension_numbers = #tpu.dot_dimension_numbers<[1], [0], [0], [1], [0, 0, 1, 1], [], []>} : vector<16x32xf32>, vector<32x256xf32>, vector<16x256xf32> -> vector<16x256xf32>
    %31 = arith.mulf %30, %9 : vector<16x256xf32>
    %c0_23 = arith.constant 0 : index
    %c0_24 = arith.constant 0 : index
    %32 = vector.load %arg9[%c0_23, %c0_24] : memref<256x32xf32, #tpu.memory_space<vmem>>, vector<256x32xf32>
    %cst_25 = arith.constant dense<0.000000e+00> : vector<16x32xf32>
    %33 = tpu.matmul %31, %32, %cst_25 {dimension_numbers = #tpu.dot_dimension_numbers<[1], [0], [0], [1], [0, 0, 1, 1], [], []>} : vector<16x256xf32>, vector<256x32xf32>, vector<16x32xf32> -> vector<16x32xf32>
    %c0_26 = arith.constant 0 : index
    %c0_27 = arith.constant 0 : index
    %34 = vector.load %arg10[%c0_26, %c0_27] : memref<16x32xf32, #tpu.memory_space<vmem>>, vector<16x32xf32>
    tpu.vector_store %arg10[%c0_26, %c0_27], %33 {strides = array<i32>} : memref<16x32xf32, #tpu.memory_space<vmem>>, vector<16x32xf32>,
    return
  }
  func.func @transform_0(%arg0: i32) -> (i32, i32) {
    %c0_i32 = arith.constant 0 : i32
    %c0_i32_0 = arith.constant 0 : i32
    return %arg0, %c0_i32 : i32, i32
  }
  func.func @transform_1(%arg0: i32) -> (i32, i32) {
    %c0_i32 = arith.constant 0 : i32
    %c0_i32_0 = arith.constant 0 : i32
    return %arg0, %c0_i32 : i32, i32
  }
  func.func @transform_2(%arg0: i32) -> (i32, i32) {
    %c0_i32 = arith.constant 0 : i32
    %c0_i32_0 = arith.constant 0 : i32
    return %arg0, %c0_i32 : i32, i32
  }
  func.func @transform_3(%arg0: i32) -> (i32, i32) {
    %c0_i32 = arith.constant 0 : i32
    %c0_i32_0 = arith.constant 0 : i32
    %c0_i32_1 = arith.constant 0 : i32
    return %c0_i32, %c0_i32_0 : i32, i32
  }
  func.func @transform_4(%arg0: i32) -> (i32, i32) {
    %c0_i32 = arith.constant 0 : i32
    %c0_i32_0 = arith.constant 0 : i32
    %c0_i32_1 = arith.constant 0 : i32
    return %c0_i32, %c0_i32_0 : i32, i32
  }
  func.func @transform_5(%arg0: i32) -> (i32, i32) {
    %c0_i32 = arith.constant 0 : i32
    %c0_i32_0 = arith.constant 0 : i32
    %c0_i32_1 = arith.constant 0 : i32
    return %c0_i32, %c0_i32_0 : i32, i32
  }
  func.func @transform_6(%arg0: i32) -> (i32, i32) {
    %c0_i32 = arith.constant 0 : i32
    %c0_i32_0 = arith.constant 0 : i32
    %c0_i32_1 = arith.constant 0 : i32
    return %c0_i32, %c0_i32_0 : i32, i32
  }
  func.func @transform_7(%arg0: i32) -> (i32, i32) {
    %c0_i32 = arith.constant 0 : i32
    %c0_i32_0 = arith.constant 0 : i32
    %c0_i32_1 = arith.constant 0 : i32
    return %c0_i32, %c0_i32_0 : i32, i32
  }
  func.func @transform_8(%arg0: i32) -> (i32, i32) {
    %c0_i32 = arith.constant 0 : i32
    %c0_i32_0 = arith.constant 0 : i32
    %c0_i32_1 = arith.constant 0 : i32
    return %c0_i32, %c0_i32_0 : i32, i32
  }
  func.func @transform_9(%arg0: i32) -> (i32, i32) {
    %c0_i32 = arith.constant 0 : i32
    %c0_i32_0 = arith.constant 0 : i32
    return %arg0, %c0_i32 : i32, i32
  }
}

</mosaic_0001>

<bundles_post_ra>
// kernel: tpu_custom_call.1
= control target key start
LH: loop header
LB: loop body
LE: loop exit
PB: predicated region body
PF: predicated region fallthrough
CT: control target
= control target key end

     0   :  { %s2114_s0 = inlined_call_operand.vmem [shape: f32[32,32], index: 0, kind: input, shape index: {}]   ;;  %s2115_s1 = inlined_call_operand.hbm [shape: f32[32,128], index: 1, kind: input, shape index: {}]   ;;  %s2116_s2 = inlined_call_operand.vmem [shape: f32[32,8], index: 2, kind: input, shape index: {}]   ;;  %s2117_s3 = inlined_call_operand.vmem [shape: f32[32,256], index: 3, kind: input, shape index: {}]   ;;  %s2118_s4 = inlined_call_operand.vmem [shape: f32[128,512], index: 4, kind: input, shape index: {}]   ;;  %s2119_s5 = inlined_call_operand.vmem [shape: f32[256,32], index: 5, kind: input, shape index: {}]   ;;  %s2120_s6 = inlined_call_operand.hbm [shape: f32[32,32], index: 6, kind: input, shape index: {}]   ;;  %s2121_s7 = inlined_call_operand.hbm [shape: f32[32,256], index: 7, kind: input, shape index: {}]   ;;  %s2122_s8 = inlined_call_operand.vmem [shape: f32[256,32], index: 8, kind: input, shape index: {}]   ;;  %s2123_s9 = inlined_call_operand.hbm [shape: f32[32,32], index: 9, kind: output, shape index: {}]  }
   0x1   :  { %2127 = sst [smem:[#allocation13_spill]] %s2120_s6 }
   0x2   :  { %2128 = sst [smem:[#allocation14_spill]] %s2121_s7 }
   0x3   :  { %14 = vsyncpa [#allocation3], 0 }
   0x4   :  { %16 = vsyncpa [#allocation3 + $0x1], 0 }
   0x5   :  { %17 = vsyncpa [#allocation6], 0 }
   0x6   :  { %18 = vsyncpa [#allocation4], 0 }
   0x7   :  { %20 = vsyncpa [#allocation4 + $0x1], 0  ;;  %s1480_s30 = smov 0   ;;  %s1482_s10 = smov 0  }
   0x8   :  { %s1484_s11 = smov 0   ;;  %s1486_s12 = smov 0  }
   0x9 LB: > { %s1501_s13 = sadd.s32 4294967295, %s1418_s12   ;;  %s1125_s14 = sadd.s32 4294967294, %s1418_s12   ;;  %s1418_s12 = sphi %s1486_s12, %s2145_s12   ;;  %s1414_s11 = sphi %s1484_s11, %s2144_s11   ;;  %s1410_s10 = sphi %s1482_s10, %s2143_s10   ;;  %s1406_s30 = sphi %s1480_s30, %s2142_s30  }
   0xa   : > { %p72_p0 = scmp.ne.s32.totalorder %s1410_s10, %s1406_s30  ;;  %p73_p1 = scmp.eq.s32.totalorder %s1501_s13, 0 }
   0xb   : > { %p248_p2 = scmp.eq.s32.totalorder %s1501_s13, 1  ;;  %p254_p3 = scmp.eq.s32.totalorder %s1125_s14, 1 }
   0xc   : > { %p1510_p4 = por %p73_p1, %p72_p0  ;;  %p1126_p5 = scmp.ge.s32.totalorder %s1418_s12, 1 }
   0xd   : > { %p1515_p6 = por %p254_p3, %p72_p0  ;;  %p261_p7 = scmp.lt.s32.totalorder %s1418_s12, 3 }
   0xe   : > { %s2131_s6 = sld [smem:[#allocation13_spill]]  ;;  %s1420_s21 = smov [#allocation5]  }
   0xf   : > { %p1523_p8 = pnand %p1126_p5, %p261_p7  ;;  %s283_s22 = sshll.u32 %s1420_s21, 4  ;;  %s284_s22 = int_to_ptr.vmem [resolvable:$true] %s283_s22 }
  0x10   : > { %s2133_s7 = sld [smem:[#allocation14_spill]]  ;;  %s2124_s26 = smov 128  }
  0x11   : > { %p1187_p9 = pneg %p1523_p8  ;;  %s2125_s27 = smov 8  }
  0x12   : > { %s1423_s28 = smov [#allocation7]   ;;  %s1424_s14 = smov 256  }
  0x13   : > { %p1188_p10 = pnand %p1187_p9, %p73_p1  ;;  %s297_s29 = sshll.u32 %s1423_s28, 4  ;;  %s298_s29 = int_to_ptr.vmem [resolvable:$true] %s297_s29 }
  0x14   : > { %s281_s19 = sshll.u32 %s2131_s6, 4  ;;  %s1425_s17 = smov 16   ;;  %s282_s19 = int_to_ptr.hbm [resolvable:$true] %s281_s19 }
  0x15   : > { %1190 = dma.hbm_to_vmem [thread:$0]  (!%p1188_p10), %s282_s19, 512, %s284_s22, [#allocation6], %s2124_s26, %s2124_s26, %s2125_s27  }
  0x16   : > { %s295_s25 = sshll.u32 %s2133_s7, 4  ;;  %s1539_s18 = sadd.s32 1, %s1418_s12   ;;  %s296_s25 = int_to_ptr.hbm [resolvable:$true] %s295_s25 }
  0x17   : > { %1193 = dma.hbm_to_vmem [thread:$0]  (!%p1188_p10), %s296_s25, 1024, %s298_s29, [#allocation6], %s1424_s14, %s1424_s14, %s1425_s17  }
  0x18   : > { %s56_s21 = ssub.s32 %s1418_s12, %s1539_s18  ;;  %s59_s23 = sadd.s32 1, %s1414_s11 }
  0x19   : > { %p57_p12 = scmp.eq.s32.totalorder %s56_s21, 0  ;;  %p66_p13 = scmp.ne.s32.totalorder %s1414_s11, %s1410_s10 }
  0x1a   : > { %p67_p0 = scmp.eq.s32.totalorder %s1418_s12, 0  ;;  %p1204_p7 = scmp.lt.s32.totalorder %s1418_s12, 2 }
  0x1b   : > { %s1548_s24 = scalar_select %p57_p12, %s1414_s11, %s59_s23  }
  0x1c   : > { %p68_p3 = por %p67_p0, %p66_p13  ;;  %p1552_p5 = por %p248_p2, %p66_p13 }
  0x1d   : > { %2134 = sst [smem:[#allocation12_spill]] %s1548_s24  ;;  %s323_s22 = sand.u32 1, %s1414_s11  }
  0x1e   : > { %s1130_s28 = sshll.u32 %s323_s22, 4  ;;  %s1157_s25 = sshll.u32 %s1418_s12, 4 }
  0x1f   : > { %s332_s17 = scalar_lea.hbm %s2115_s1, %s1157_s25  ;;  %s327_s21 = scalar_lea.vmem [#allocation2], %s1130_s28 }
  0x20   : > { %s335_s26 = sshll.u32 %s327_s21, 4  ;;  %s333_s27 = sshll.u32 %s332_s17, 4  ;;  %s336_s26 = int_to_ptr.vmem [resolvable:$true] %s335_s26  ;;  %s334_s27 = int_to_ptr.hbm [resolvable:$true] %s333_s27 }
  0x21   : > { %p1562_p9 = pnand %p1204_p7, %p68_p3  ;;  %s324_s6 = scalar_lea.sflag [#allocation3], %s323_s22 }
  0x22   : > { %s1318_s7 = sshra.s32 %s334_s27, 4  ;;  %s1325_s29 = scalar_lea.hbm %s2115_s1, 32  ;;  %s1319_s7 = int_to_ptr.hbm [resolvable:$true] %s1318_s7 }
  0x23   : > { %s1320_s24 = scalar_lea.hbm %s1319_s7, 16  ;;  %p1322_p10 = pneg %p1562_p9 }
  0x24   : > { %p1321_p2 = scmp.ne.s32.totalorder %s1319_s7, %s1320_s24  ;;  %p1326_p0 = scmp.lt.s32.totalorder %s1319_s7, %s2115_s1 }
  0x25   : > { %p1327_p3 = scmp.lt.s32.totalorder %s1325_s29, %s1320_s24 }
  0x26   : > { %p1323_p12 = pnand %p1322_p10, %p1321_p2 }
  0x27   : > { %p1328_p7 = por %p1327_p3, %p1326_p0 }
  0x28   : > { %p1324_p13 = pneg %p1323_p12 }
  0x2a   : > { %p1329_p11 = pnand %p1328_p7, %p1324_p13 }
  0x2c   : > { %1332 = shalt.err (!%p1329_p11)
}
  0x2d   : > { %s2137_s22 = smov 8   ;;  %s2138_s21 = smov 128  }
  0x2e   : > { %1197 = dma.hbm_to_vmem [thread:$0]  (!%p1562_p9), %s334_s27, 256, %s336_s26, %s324_s6, %s2138_s21, %s2138_s21, %s2137_s22  }
  0x2f   : > { %356 = sbr.rel (%p1523_p8) target bundleno = 907 (0x38b), region = 56  ;;  %s1582_s25 = sand.u32 (!%p1523_p8), 1, %s1410_s10  }
  0x30   : > { %s2126_s7 = sshll.u32 (!%p1523_p8), %s1582_s25, 4  ;;  %s359_s24 = scalar_lea.sflag (!%p1523_p8), [#allocation3], %s1582_s25 }
  0x31   : > { %s1588_s28 = scalar_lea.vmem (!%p1523_p8), [#allocation2], %s2126_s7 }
  0x34   : > { %1393 = dma.done.wait (%p1510_p4), %s359_s24, 256  }
  0x35   : > { %1395 = vsyncadd (%p1510_p4), %s359_s24, 4294967040 }
  0x36   : > { %1397 = dma.done.wait (%p73_p1), [#allocation6], 1536  }
  0x37   : > { %1399 = vsyncadd (%p73_p1), [#allocation6], 4294965760  ;;  %v588_v0 = vld [vmem:[%s2118_s4 + $0x1e0] sm:$0xff]  ;;  %v589_v1 = vld [vmem:[%s2118_s4 + $0x1e8] sm:$0xff]  ;;  %s1138_s15 = sshll.u32 %s1501_s13, 1  ;;  %vm475_vm0 = vcmask 261120  }
  0x38   : > { %v584_v2 = vld [vmem:[%s2118_s4 + $0x1c0] sm:$0xff]  ;;  %592 = vmatpush.msra.mxu2 %v588_v0  ;;  %615 = vmatpush.msra.mxu3 %v589_v1  ;;  %v585_v3 = vld [vmem:[%s2118_s4 + $0x1c8] sm:$0xff]  ;;  %p419_p1 = scmp.lt.s32.totalorder %s1138_s15, 3  ;;  %v473_v14 = vld [vmem:[%s2117_s3 + $0x30] sm:$0xff]  ;;  %s1426_s17 = smov 8   ;;  %vm458_vm1 = vcmask 64512  }
  0x39   : > { %v580_v4 = vld [vmem:[%s2118_s4 + $0x1a0] sm:$0xff]  ;;  %v581_v5 = vld [vmem:[%s2118_s4 + $0x1a8] sm:$0xff]  ;;  %v474_v15 = vld [vmem:[%s2117_s3 + $0x38] sm:$0xff]  ;;  %494 = vmatpush.msra.mxu0 %v473_v14  ;;  %s1427_s21 = smov 24   ;;  %vm461_vm2 = vcmask 130048   ;;  %vm464_vm3 = vcmask 195584  }
  0x3a   : > { %593 = vmatpush.msra.mxu2 %v584_v2  ;;  %616 = vmatpush.msra.mxu3 %v585_v3  ;;  %v576_v6 = vld [vmem:[%s2118_s4 + $0x180] sm:$0xff]  ;;  %v577_v7 = vld [vmem:[%s2118_s4 + $0x188] sm:$0xff]  ;;  %s2147_s15 = smov (!%p419_p1, %s1138_s15), 3  ;;  %v469_v20 = vld [vmem:[%s2117_s3 + $0x10] sm:$0xff]  ;;  %s1368_s14 = scalar_lea.hbm %s2123_s9, 32 }
  0x3b   : > { %v572_v8 = vld [vmem:[%s2118_s4 + $0x160] sm:$0xff]  ;;  %v573_v9 = vld [vmem:[%s2118_s4 + $0x168] sm:$0xff]  ;;  %s1139_s20 = sshll.u32 %s2147_s15, 3  ;;  %517 = vmatpush.msra.mxu1 %v474_v15  ;;  %v470_v21 = vld [vmem:[%s2117_s3 + $0x18] sm:$0xff]  ;;  %s1428_s15 = smov 16  }
  0x3c   : > { %594 = vmatpush.msra.mxu2 %v580_v4  ;;  %617 = vmatpush.msra.mxu3 %v581_v5  ;;  %v568_v10 = vld [vmem:[%s2118_s4 + $0x140] sm:$0xff]  ;;  %v569_v11 = vld [vmem:[%s2118_s4 + $0x148] sm:$0xff]  ;;  %s1679_s22 = scalar_lea.vmem %s2114_s0, %s1139_s20  ;;  %v703_v43 = vld [vmem:[%s2119_s5 + $0x78] sm:$0xff]  ;;  %s429_s26 = scalar_lea.vmem %s2116_s2, %s1139_s20 }
  0x3d   : > { %v564_v12 = vld [vmem:[%s2118_s4 + $0x120] sm:$0xff]  ;;  %v565_v13 = vld [vmem:[%s2118_s4 + $0x128] sm:$0xff]  ;;  %v719_v44 = vld [vmem:[%s2119_s5 + $0xf8] sm:$0xff] }
  0x3e   : > { %595 = vmatpush.msra.mxu2 %v576_v6  ;;  %618 = vmatpush.msra.mxu3 %v577_v7  ;;  %v471_v16 = vld [vmem:[%s2117_s3 + $0x20] sm:$0xff]  ;;  %v561_v18 = vld [vmem:[%s2118_s4 + $0x108] sm:$0xff]  ;;  %v702_v45 = vld [vmem:[%s2119_s5 + $0x70] sm:$0xff] }
  0x3f   : > { %v560_v17 = vld [vmem:[%s2118_s4 + $0x100] sm:$0xff]  ;;  %v472_v19 = vld [vmem:[%s2117_s3 + $0x28] sm:$0xff]  ;;  %495 = vmatpush.msra.mxu0 %v471_v16  ;;  %v718_v46 = vld [vmem:[%s2119_s5 + $0xf0] sm:$0xff] }
  0x40   : > { %596 = vmatpush.msra.mxu2 %v572_v8  ;;  %619 = vmatpush.msra.mxu3 %v573_v9  ;;  %v556_v22 = vld [vmem:[%s2118_s4 + $0xe0] sm:$0xff]  ;;  %v557_v23 = vld [vmem:[%s2118_s4 + $0xe8] sm:$0xff]  ;;  %v699_v52 = vld [vmem:[%s2119_s5 + $0x58] sm:$0xff] }
  0x41   : > { %518 = vmatpush.msra.mxu1 %v472_v19  ;;  %v467_v24 = vld [vmem:[%s2117_s3] sm:$0xff]  ;;  %v468_v25 = vld [vmem:[%s2117_s3 + $0x8] sm:$0xff]  ;;  %496 = vmatpush.msra.mxu0 %v469_v20  ;;  %v715_v53 = vld [vmem:[%s2119_s5 + $0xd8] sm:$0xff] }
  0x42   : > { %597 = vmatpush.msra.mxu2 %v568_v10  ;;  %620 = vmatpush.msra.mxu3 %v569_v11  ;;  %v552_v26 = vld [vmem:[%s2118_s4 + $0xc0] sm:$0xff]  ;;  %v553_v27 = vld [vmem:[%s2118_s4 + $0xc8] sm:$0xff]  ;;  %v698_v54 = vld [vmem:[%s2119_s5 + $0x50] sm:$0xff] }
  0x43   : > { %519 = vmatpush.msra.mxu1 %v470_v21  ;;  %v432_v28 = vld [vmem:[%s1679_s22] sm:$0xff]  ;;  %v549_v30 = vld [vmem:[%s2118_s4 + $0xa8] sm:$0xff]  ;;  %497 = vmatpush.msra.mxu0 %v467_v24  ;;  %v714_v55 = vld [vmem:[%s2119_s5 + $0xd0] sm:$0xff] }
  0x44   : > { %598 = vmatpush.msra.mxu2 %v564_v12  ;;  %621 = vmatpush.msra.mxu3 %v565_v13  ;;  %v548_v29 = vld [vmem:[%s2118_s4 + $0xa0] sm:$0xff]  ;;  %v545_v32 = vld [vmem:[%s2118_s4 + $0x88] sm:$0xff]  ;;  %v695_v60 = vld [vmem:[%s2119_s5 + $0x38] sm:$0xff] }
  0x45   : > { %520 = vmatpush.msra.mxu1 %v468_v25  ;;  %v544_v31 = vld [vmem:[%s2118_s4 + $0x80] sm:$0xff]  ;;  %1142 = vmatmul.msk.f32.vlgmr.msra.gmra.mxu0 %vm475_vm0, %v432_v28  ;;  %v541_v34 = vld [vmem:[%s2118_s4 + $0x68] sm:$0xff]  ;;  %v711_v61 = vld [vmem:[%s2119_s5 + $0xb8] sm:$0xff] }
  0x46   : > { %599 = vmatpush.msra.mxu2 %v560_v17  ;;  %622 = vmatpush.msra.mxu3 %v561_v18  ;;  %v540_v33 = vld [vmem:[%s2118_s4 + $0x60] sm:$0xff]  ;;  %v537_v36 = vld [vmem:[%s2118_s4 + $0x48] sm:$0xff]  ;;  %v694_v62 = vld [vmem:[%s2119_s5 + $0x30] sm:$0xff] }
  0x47   : > { %1144 = vmatmul.msk.f32.vlgmr.msra.gmra.mxu1 %vm475_vm0, %v432_v28  ;;  %v536_v35 = vld [vmem:[%s2118_s4 + $0x40] sm:$0xff]  ;;  %v433_v37 = vld [vmem:[%s1679_s22 + $0x8] sm:$0xff]  ;;  %v710_v63 = vld [vmem:[%s2119_s5 + $0xb0] sm:$0xff] }
  0x48   : > { %600 = vmatpush.msra.mxu2 %v556_v22  ;;  %623 = vmatpush.msra.mxu3 %v557_v23  ;;  %v532_v38 = vld [vmem:[%s2118_s4 + $0x20] sm:$0xff]  ;;  %v533_v39 = vld [vmem:[%s2118_s4 + $0x28] sm:$0xff]  ;;  %v691_v4 = vld [vmem:[%s2119_s5 + $0x18] sm:$0xff] }
  0x49   : > { %v528_v40 = vld [vmem:[%s2118_s4] sm:$0xff]  ;;  %v529_v41 = vld [vmem:[%s2118_s4 + $0x8] sm:$0xff]  ;;  %v707_v5 = vld [vmem:[%s2119_s5 + $0x98] sm:$0xff] }
  0x4a   : > { %601 = vmatpush.msra.mxu2 %v552_v26  ;;  %624 = vmatpush.msra.mxu3 %v553_v27  ;;  %v1736_v42 = vld [vmem:[%s1588_s28] sm:$0xff]  ;;  %v701_v47 = vld [vmem:[%s2119_s5 + $0x68] sm:$0xff] }
  0x4b   : > { %v717_v48 = vld [vmem:[%s2119_s5 + $0xe8] sm:$0xff]  ;;  %v700_v49 = vld [vmem:[%s2119_s5 + $0x60] sm:$0xff]  ;;  %v690_v6 = vld [vmem:[%s2119_s5 + $0x10] sm:$0xff] }
  0x4c   : > { %602 = vmatpush.msra.mxu2 %v548_v29  ;;  %625 = vmatpush.msra.mxu3 %v549_v30  ;;  %v716_v50 = vld [vmem:[%s2119_s5 + $0xe0] sm:$0xff]  ;;  %v1765_v51 = vld [vmem:[%s1588_s28 + $0x8] sm:$0xff]  ;;  %v706_v7 = vld [vmem:[%s2119_s5 + $0x90] sm:$0xff] }
  0x4d   : > { %1143 = vmatmul.msk.f32.gmra.mxu0 %vm475_vm0, %v433_v37  ;;  %v697_v56 = vld [vmem:[%s2119_s5 + $0x48] sm:$0xff]  ;;  %v696_v58 = vld [vmem:[%s2119_s5 + $0x40] sm:$0xff]  ;;  %v590_v26 = vld [vmem:[%s2118_s4 + $0x1f0] sm:$0xff] }
  0x4e   : > { %603 = vmatpush.msra.mxu2 %v544_v31  ;;  %626 = vmatpush.msra.mxu3 %v545_v32  ;;  %v713_v57 = vld [vmem:[%s2119_s5 + $0xc8] sm:$0xff]  ;;  %v712_v59 = vld [vmem:[%s2119_s5 + $0xc0] sm:$0xff]  ;;  %v586_v27 = vld [vmem:[%s2118_s4 + $0x1d0] sm:$0xff] }
  0x4f   : > { %1145 = vmatmul.msk.f32.gmra.mxu1 %vm475_vm0, %v433_v37  ;;  %v693_v0 = vld [vmem:[%s2119_s5 + $0x28] sm:$0xff]  ;;  %v692_v2 = vld [vmem:[%s2119_s5 + $0x20] sm:$0xff]  ;;  %638 = vmatpush.msrb.mxu0 %v590_v26  ;;  %v582_v29 = vld [vmem:[%s2118_s4 + $0x1b0] sm:$0xff] }
  0x50   : > { %604 = vmatpush.msra.mxu2 %v540_v33  ;;  %627 = vmatpush.msra.mxu3 %v541_v34  ;;  %v709_v1 = vld [vmem:[%s2119_s5 + $0xa8] sm:$0xff]  ;;  %v708_v3 = vld [vmem:[%s2119_s5 + $0xa0] sm:$0xff]  ;;  %v578_v30 = vld [vmem:[%s2118_s4 + $0x190] sm:$0xff] }
  0x51   : > { %v689_v8 = vld [vmem:[%s2119_s5 + $0x8] sm:$0xff]  ;;  %v688_v10 = vld [vmem:[%s2119_s5] sm:$0xff]  ;;  %639 = vmatpush.msrb.mxu0 %v586_v27  ;;  %v574_v31 = vld [vmem:[%s2118_s4 + $0x170] sm:$0xff] }
  0x52   : > { %605 = vmatpush.msra.mxu2 %v536_v35  ;;  %628 = vmatpush.msra.mxu3 %v537_v36  ;;  %v705_v9 = vld [vmem:[%s2119_s5 + $0x88] sm:$0xff]  ;;  %v704_v11 = vld [vmem:[%s2119_s5 + $0x80] sm:$0xff]  ;;  %v570_v33 = vld [vmem:[%s2118_s4 + $0x150] sm:$0xff] }
  0x53   : > { %v436_v12 = vld [vmem:[%s429_s26] sm:$0xff]  ;;  %v437_v13 = vld [vmem:[%s429_s26 + $0x8] sm:$0xff]  ;;  %640 = vmatpush.msrb.mxu0 %v582_v29  ;;  %v566_v34 = vld [vmem:[%s2118_s4 + $0x130] sm:$0xff] }
  0x54   : > { %606 = vmatpush.msra.mxu2 %v532_v38  ;;  %629 = vmatpush.msra.mxu3 %v533_v39  ;;  %v562_v37 = vld [vmem:[%s2118_s4 + $0x110] sm:$0xff]  ;;  %v543_v26 = vld [vmem:[%s2118_s4 + $0x78] sm:$0xff] }
  0x55   : > { %440 = vrot.lane.b32.xlu0 %v436_v12, %s1426_s17  ;;  %452 = vrot.lane.b32.xlu1 %v436_v12, %s1427_s21  ;;  %v558_v39 = vld [vmem:[%s2118_s4 + $0xf0] sm:$0xff]  ;;  %v539_v29 = vld [vmem:[%s2118_s4 + $0x58] sm:$0xff] }
  0x56   : > { %607 = vmatpush.msra.mxu2 %v528_v40  ;;  %630 = vmatpush.msra.mxu3 %v529_v41  ;;  %v554_v41 = vld [vmem:[%s2118_s4 + $0xd0] sm:$0xff] }
  0x57   : > { %608 = vmatmul.f32.vlgmr.msra.gmra.mxu2 %v1736_v42  ;;  %631 = vmatmul.f32.vlgmr.msra.gmra.mxu3 %v1736_v42 }
  0x58   : > { %720 = vmatpush.msrb.mxu2 %v703_v43  ;;  %743 = vmatpush.msrb.mxu3 %v719_v44 }
  0x59   : > { %448 = vrot.lane.b32.xlu2 %v437_v13, %s1428_s15  ;;  %641 = vmatpush.msrb.mxu0 %v578_v30  ;;  %v535_v30 = vld [vmem:[%s2118_s4 + $0x38] sm:$0xff] }
  0x5a   : > { %721 = vmatpush.msrb.mxu2 %v702_v45  ;;  %744 = vmatpush.msrb.mxu3 %v718_v46  ;;  %v550_v45 = vld [vmem:[%s2118_s4 + $0xb0] sm:$0xff] }
  0x5b   : > { %642 = vmatpush.msrb.mxu0 %v574_v31  ;;  %v531_v31 = vld [vmem:[%s2118_s4 + $0x18] sm:$0xff] }
  0x5c   : > { %722 = vmatpush.msrb.mxu2 %v701_v47  ;;  %745 = vmatpush.msrb.mxu3 %v717_v48 }
  0x5d   : > { %446 = vrot.lane.b32.xlu0 %v436_v12, %s1428_s15  ;;  %442 = vrot.lane.b32.xlu1 %v437_v13, %s1426_s17  ;;  %s2139_s15 = sshll.u32 %s1582_s25, 4 }
  0x5e   : > { %723 = vmatpush.msrb.mxu2 %v700_v49  ;;  %746 = vmatpush.msrb.mxu3 %v716_v50  ;;  %v546_v50 = vld [vmem:[%s2118_s4 + $0x90] sm:$0xff]  ;;  %s417_s20 = scalar_lea.vmem [#allocation8], %s2139_s15 }
  0x5f   : > { %611 = vmatmul.f32.gmra.mxu2 %v1765_v51  ;;  %634 = vmatmul.f32.gmra.mxu3 %v1765_v51  ;;  %s1006_s7 = sshll.u32 %s417_s20, 4  ;;  %s1007_s7 = int_to_ptr.vmem [resolvable:$true] %s1006_s7 }
  0x60   : > { %724 = vmatpush.msrb.mxu2 %v699_v52  ;;  %747 = vmatpush.msrb.mxu3 %v715_v53  ;;  %v542_v53 = vld [vmem:[%s2118_s4 + $0x70] sm:$0xff] }
  0x61   : > { %454 = vrot.lane.b32.xlu2 %v437_v13, %s1427_s21  ;;  %643 = vmatpush.msrb.mxu0 %v570_v33  ;;  %v856_v33 = vld [vmem:[#allocation7 + $0x38] sm:$0xff]  ;;  %s1158_s21 = sshll.u32 %s1501_s13, 4  ;;  %s994_s13 = scalar_lea.sflag [#allocation4], %s1582_s25 }
  0x62   : > { %725 = vmatpush.msrb.mxu2 %v698_v54  ;;  %748 = vmatpush.msrb.mxu3 %v714_v55  ;;  %s1005_s22 = scalar_lea.hbm %s2123_s9, %s1158_s21 }
  0x63   : > { %644 = vmatpush.msrb.mxu0 %v566_v34  ;;  %v855_v34 = vld [vmem:[#allocation7 + $0x30] sm:$0xff]  ;;  %s1008_s6 = sshll.u32 %s1005_s22, 4  ;;  %s1009_s6 = int_to_ptr.hbm [resolvable:$true] %s1008_s6 }
  0x64   : > { %726 = vmatpush.msrb.mxu2 %v697_v56  ;;  %749 = vmatpush.msrb.mxu3 %v713_v57  ;;  %v538_v57 = vld [vmem:[%s2118_s4 + $0x50] sm:$0xff]  ;;  %s1362_s26 = sshra.s32 %s1009_s6, 4  ;;  %s1363_s26 = int_to_ptr.hbm [resolvable:$true] %s1362_s26 }
  0x65   : > { %645 = vmatpush.msrb.mxu0 %v562_v37  ;;  %v852_v37 = vld [vmem:[#allocation7 + $0x18] sm:$0xff]  ;;  %s1364_s27 = scalar_lea.hbm %s1363_s26, 16  ;;  %p1369_p9 = scmp.lt.s32.totalorder %s1363_s26, %s2123_s9 }
  0x66   : > { %727 = vmatpush.msrb.mxu2 %v696_v58  ;;  %750 = vmatpush.msrb.mxu3 %v712_v59  ;;  %v534_v59 = vld [vmem:[%s2118_s4 + $0x30] sm:$0xff]  ;;  %p1365_p4 = scmp.ne.s32.totalorder %s1363_s26, %s1364_s27  ;;  %p1370_p2 = scmp.lt.s32.totalorder %s1368_s14, %s1364_s27 }
  0x67   : > { %646 = vmatpush.msrb.mxu0 %v558_v39  ;;  %v850_v39 = vld [vmem:[#allocation7 + $0x8] sm:$0xff] }
  0x68   : > { %728 = vmatpush.msrb.mxu2 %v695_v60  ;;  %751 = vmatpush.msrb.mxu3 %v711_v61  ;;  %p1366_p8 = pnand %p1365_p4, %p1552_p5  ;;  %p1371_p10 = por %p1370_p2, %p1369_p9 }
  0x69   : > { %647 = vmatpush.msrb.mxu0 %v554_v41  ;;  %v944_v41 = vld [vmem:[%s2122_s8 + $0xf8] sm:$0xff] }
  0x6a   : > { %729 = vmatpush.msrb.mxu2 %v694_v62  ;;  %752 = vmatpush.msrb.mxu3 %v710_v63  ;;  %v530_v63 = vld [vmem:[%s2118_s4 + $0x10] sm:$0xff]  ;;  %p1367_p11 = pneg %p1366_p8 }
  0x6b   : > { %648 = vmatpush.msrb.mxu0 %v550_v45 }
  0x6c   : > { %730 = vmatpush.msrb.mxu2 %v693_v0  ;;  %753 = vmatpush.msrb.mxu3 %v709_v1  ;;  %v787_v1 = vld [vmem:[#allocation5 + $0x18] sm:$0xff]  ;;  %p1372_p12 = pnand %p1371_p10, %p1367_p11 }
  0x6d   : > { %649 = vmatpush.msrb.mxu0 %v546_v50  ;;  %v941_v50 = vld [vmem:[%s2122_s8 + $0xe0] sm:$0xff] }
  0x6e   : > { %731 = vmatpush.msrb.mxu2 %v692_v2  ;;  %754 = vmatpush.msrb.mxu3 %v708_v3  ;;  %v786_v3 = vld [vmem:[#allocation5 + $0x10] sm:$0xff] }
  0x6f   : > { %650 = vmatpush.msrb.mxu0 %v542_v53  ;;  %v940_v53 = vld [vmem:[%s2122_s8 + $0xd8] sm:$0xff] }
  0x70   : > { %732 = vmatpush.msrb.mxu2 %v691_v4  ;;  %755 = vmatpush.msrb.mxu3 %v707_v5  ;;  %v785_v4 = vld [vmem:[#allocation5 + $0x8] sm:$0xff]  ;;  %v784_v5 = vld [vmem:[#allocation5] sm:$0xff] }
  0x71   : > { %651 = vmatpush.msrb.mxu0 %v538_v57 }
  0x72   : > { %733 = vmatpush.msrb.mxu2 %v690_v6  ;;  %756 = vmatpush.msrb.mxu3 %v706_v7  ;;  %v591_v6 = vld [vmem:[%s2118_s4 + $0x1f8] sm:$0xff] }
  0x73   : > { %652 = vmatpush.msrb.mxu0 %v534_v59  ;;  %v587_v7 = vld [vmem:[%s2118_s4 + $0x1d8] sm:$0xff]  ;;  %661 = vmatpush.msrb.mxu1 %v591_v6 }
  0x74   : > { %734 = vmatpush.msrb.mxu2 %v689_v8  ;;  %757 = vmatpush.msrb.mxu3 %v705_v9  ;;  %v583_v8 = vld [vmem:[%s2118_s4 + $0x1b8] sm:$0xff] }
  0x75   : > { %653 = vmatpush.msrb.mxu0 %v530_v63  ;;  %662 = vmatpush.msrb.mxu1 %v587_v7  ;;  %v579_v9 = vld [vmem:[%s2118_s4 + $0x198] sm:$0xff] }
  0x76   : > { %735 = vmatpush.msrb.mxu2 %v688_v10  ;;  %758 = vmatpush.msrb.mxu3 %v704_v11  ;;  %v575_v10 = vld [vmem:[%s2118_s4 + $0x178] sm:$0xff] }
  0x77   : > { %654 = vmatmul.f32.vlgmr.msrb.gmra.mxu0 %v1736_v42  ;;  %663 = vmatpush.msrb.mxu1 %v583_v8  ;;  %v571_v11 = vld [vmem:[%s2118_s4 + $0x158] sm:$0xff] }
  0x78   : > { %806 = vmatpush.msra.mxu0 %v787_v1  ;;  %968 = vmatpush.msra.mxu2 %v944_v41 }
  0x79   : > { %664 = vmatpush.msrb.mxu1 %v579_v9  ;;  %1159 = vmatpush.msra.mxu3 %v944_v41 }
  0x7a   : > { %807 = vmatpush.msra.mxu0 %v786_v3 }
  0x7b   : > { %665 = vmatpush.msrb.mxu1 %v575_v10 }
  0x7c   : > { %808 = vmatpush.msra.mxu0 %v785_v4 }
  0x7d   : > { %666 = vmatpush.msrb.mxu1 %v571_v11 }
  0x7e   : > { %809 = vmatpush.msra.mxu0 %v784_v5 }
  0x7f   : > { %657 = vmatmul.f32.gmra.mxu0 %v1765_v51 }
  0x80   : > { %898 = vmatpush.msrb.mxu0 %v856_v33  ;;  %v914_v33 = vld [vmem:[%s2122_s8 + $0x8] sm:$0xff] }
  0xb3   : > { %v449_v38 = vpop.permute.xlu2 %448 }
  0xbb   : > { %v455_v54 = vpop.permute.xlu2 %454 }
  0xc2   : > { %v499_v14 = vpop.f32.mrf.mxu0 }
  0xc4   : > { %v522_v15 = vpop.f32.mrf.mxu1 }
  0xc7   : > { %v441_v28 = vpop.permute.xlu0 %440  ;;  %v453_v32 = vpop.permute.xlu1 %452 }
  0xc8   : > { %v459_v35 = vsel %vm458_vm1, %v436_v12, %v441_v28 }
  0xca   : > { %v502_v20 = vpop.f32.mrf.mxu0 }
  0xcc   : > { %v525_v21 = vpop.f32.mrf.mxu1 }
  0xcf   : > { %v447_v36 = vpop.permute.xlu0 %446  ;;  %v443_v43 = vpop.permute.xlu1 %442 }
  0xd0   : > { %v462_v40 = vsel %vm461_vm2, %v459_v35, %v447_v36  ;;  %v460_v48 = vsel %vm458_vm1, %v437_v13, %v443_v43  ;;  %v567_v13 = vld [vmem:[%s2118_s4 + $0x138] sm:$0xff]  ;;  %v854_v35 = vld [vmem:[#allocation7 + $0x28] sm:$0xff]  ;;  %v853_v36 = vld [vmem:[#allocation7 + $0x20] sm:$0xff] }
  0xd1   : > { %v1881_v44 = vsel %vm464_vm3, %v462_v40, %v453_v32  ;;  %v463_v55 = vsel %vm461_vm2, %v460_v48, %v449_v38  ;;  %667 = vmatpush.msrb.mxu1 %v567_v13  ;;  %899 = vmatpush.msrb.mxu0 %v854_v35  ;;  %v851_v38 = vld [vmem:[#allocation7 + $0x10] sm:$0xff]  ;;  %v849_v40 = vld [vmem:[#allocation7] sm:$0xff] }
  0xd2   : > { %vm766_vm4 = vcmp.gt.f32.partialorder %v1881_v44, 0.0  ;;  %v466_v58 = vsel %vm464_vm3, %v463_v55, %v455_v54  ;;  %v927_v43 = vld [vmem:[%s2122_s8 + $0x70] sm:$0xff]  ;;  %v913_v35 = vld [vmem:[%s2122_s8] sm:$0xff] }
  0xd3   : > { %vm767_vm5 = vcmp.gt.f32.partialorder %v466_v58, 0.0  ;;  %900 = vmatpush.msrb.mxu0 %v852_v37  ;;  %v923_v54 = vld [vmem:[%s2122_s8 + $0x50] sm:$0xff] }
  0xd4   : > { %v939_v55 = vld [vmem:[%s2122_s8 + $0xd0] sm:$0xff] }
  0xd5   : > { %901 = vmatpush.msrb.mxu0 %v850_v39 }
  0xda   : > { %v609_v16 = vpop.f32.mrf.mxu2  ;;  %v632_v17 = vpop.f32.mrf.mxu3 }
  0xdb   : > { %v684_v18 = vmul.f32 %v609_v16, %v499_v14  ;;  %v685_v19 = vmul.f32 %v632_v17, %v522_v15  ;;  %v563_v15 = vld [vmem:[%s2118_s4 + $0x118] sm:$0xff] }
  0xdc   : > { %v559_v17 = vld [vmem:[%s2118_s4 + $0xf8] sm:$0xff]  ;;  %668 = vmatpush.msrb.mxu1 %v563_v15 }
  0xdd   : > { %736 = vmatmul.f32.vlgmr.msrb.gmra.mxu2 %v684_v18  ;;  %759 = vmatmul.f32.vlgmr.msrb.gmra.mxu3 %v685_v19  ;;  %v555_v18 = vld [vmem:[%s2118_s4 + $0xd8] sm:$0xff] }
  0xde   : > { %669 = vmatpush.msrb.mxu1 %v559_v17  ;;  %v938_v17 = vld [vmem:[%s2122_s8 + $0xc8] sm:$0xff] }
  0xe0   : > { %670 = vmatpush.msrb.mxu1 %v555_v18  ;;  %v921_v18 = vld [vmem:[%s2122_s8 + $0x40] sm:$0xff] }
  0xe2   : > { %v612_v22 = vpop.f32.mrf.mxu2  ;;  %v635_v23 = vpop.f32.mrf.mxu3 }
  0xe3   : > { %v686_v24 = vmul.f32 %v612_v22, %v502_v20  ;;  %v687_v25 = vmul.f32 %v635_v23, %v525_v21  ;;  %v551_v20 = vld [vmem:[%s2118_s4 + $0xb8] sm:$0xff] }
  0xe4   : > { %v547_v22 = vld [vmem:[%s2118_s4 + $0x98] sm:$0xff]  ;;  %671 = vmatpush.msrb.mxu1 %v551_v20 }
  0xe5   : > { %739 = vmatmul.f32.gmra.mxu2 %v686_v24  ;;  %762 = vmatmul.f32.gmra.mxu3 %v687_v25  ;;  %v920_v20 = vld [vmem:[%s2122_s8 + $0x38] sm:$0xff] }
  0xe6   : > { %672 = vmatpush.msrb.mxu1 %v547_v22  ;;  %v919_v22 = vld [vmem:[%s2122_s8 + $0x30] sm:$0xff] }
  0xe8   : > { %673 = vmatpush.msrb.mxu1 %v543_v26  ;;  %v917_v26 = vld [vmem:[%s2122_s8 + $0x20] sm:$0xff] }
  0xea   : > { %674 = vmatpush.msrb.mxu1 %v539_v29  ;;  %v932_v29 = vld [vmem:[%s2122_s8 + $0x98] sm:$0xff] }
  0xec   : > { %675 = vmatpush.msrb.mxu1 %v535_v30  ;;  %v915_v30 = vld [vmem:[%s2122_s8 + $0x10] sm:$0xff] }
  0xee   : > { %676 = vmatpush.msrb.mxu1 %v531_v31  ;;  %v931_v31 = vld [vmem:[%s2122_s8 + $0x90] sm:$0xff] }
  0xef   : > { %677 = vmatmul.f32.vlgmr.msrb.gmra.mxu1 %v1736_v42 }
  0xf0   : > { %875 = vmatpush.msra.mxu1 %v855_v34  ;;  %v930_v34 = vld [vmem:[%s2122_s8 + $0x88] sm:$0xff] }
  0xf2   : > { %876 = vmatpush.msra.mxu1 %v853_v36  ;;  %v929_v36 = vld [vmem:[%s2122_s8 + $0x80] sm:$0xff] }
  0xf4   : > { %v1967_v32 = vpop.f32.mrf.mxu0  ;;  %877 = vmatpush.msra.mxu1 %v851_v38 }
  0xf6   : > { %878 = vmatpush.msra.mxu1 %v849_v40 }
  0xf7   : > { %680 = vmatmul.f32.gmra.mxu1 %v1765_v51  ;;  %v928_v51 = vld [vmem:[%s2122_s8 + $0x78] sm:$0xff] }
  0xf8   : > { %945 = vmatpush.msrb.mxu1 %v928_v51 }
  0xfa   : > { %946 = vmatpush.msrb.mxu1 %v927_v43 }
  0xfc   : > { %v1970_v42 = vpop.f32.mrf.mxu0 }
 0x160   : > { %v737_v46 = vpop.f32.mrf.mxu2  ;;  %v760_v47 = vpop.f32.mrf.mxu3 }
 0x161   : > { %v761_v49 = vadd.f32 %v760_v47, %v737_v46  ;;  %v926_v46 = vld [vmem:[%s2122_s8 + $0x68] sm:$0xff] }
 0x162   : > { %v942_v47 = vld [vmem:[%s2122_s8 + $0xe8] sm:$0xff]  ;;  %947 = vmatpush.msrb.mxu1 %v926_v46 }
 0x163   : > { %v768_v52 = vsel %vm766_vm4, %v761_v49, -1e+30  ;;  %v925_v49 = vld [vmem:[%s2122_s8 + $0x60] sm:$0xff] }
 0x164   : > { %v770_v56 = vsel %vm475_vm0, %v768_v52, -inf  ;;  %948 = vmatpush.msrb.mxu1 %v925_v49 }
 0x165   : > { %771 = vmax.xlane.f32.xlu0 %v770_v56 }
 0x168   : > { %v740_v60 = vpop.f32.mrf.mxu2  ;;  %v763_v61 = vpop.f32.mrf.mxu3 }
 0x169   : > { %v764_v62 = vadd.f32 %v763_v61, %v740_v60 }
 0x16b   : > { %v769_v0 = vsel %vm767_vm5, %v764_v62, -1e+30 }
 0x16c   : > { %v773_v2 = vsel %vm475_vm0, %v769_v0, -inf  ;;  %v678_v37 = vpop.f32.mrf.mxu1 }
 0x16d   : > { %774 = vmax.xlane.f32.xlu1 %v773_v2 }
 0x174   : > { %v681_v38 = vpop.f32.mrf.mxu1 }
 0x1d8   : > { %v772_v12 = vpop.xlane.xlu0 %771 }
 0x1d9   : > { %v776_v14 = vsub.f32 %v768_v52, %v772_v12  ;;  %v924_v52 = vld [vmem:[%s2122_s8 + $0x58] sm:$0xff] }
 0x1da   : > { %949 = vmatpush.msrb.mxu1 %v924_v52 }
 0x1db   : > { %v778_v16 = vmul.f32 1.442695, %v776_v14 }
 0x1dc   : > { %950 = vmatpush.msrb.mxu1 %v923_v54 }
 0x1dd   : > { %1250 = vpow2.f32 %v778_v16  ;;  %v922_v16 = vld [vmem:[%s2122_s8 + $0x48] sm:$0xff] }
 0x1de   : > { %951 = vmatpush.msrb.mxu1 %v922_v16 }
 0x1e0   : > { %v775_v19 = vpop.xlane.xlu1 %774  ;;  %952 = vmatpush.msrb.mxu1 %v921_v18 }
 0x1e1   : > { %v777_v21 = vsub.f32 %v769_v0, %v775_v19  ;;  %v937_v19 = vld [vmem:[%s2122_s8 + $0xc0] sm:$0xff] }
 0x1e2   : > { %953 = vmatpush.msrb.mxu1 %v920_v20 }
 0x1e3   : > { %v1251_v23 = vpop.eup %1250  ;;  %v780_v24 = vmul.f32 1.442695, %v777_v21  ;;  %v936_v21 = vld [vmem:[%s2122_s8 + $0xb8] sm:$0xff] }
 0x1e4   : > { %v1946_v25 = vmul.f32 %v1251_v23, %v1881_v44  ;;  %v943_v44 = vld [vmem:[%s2122_s8 + $0xf0] sm:$0xff]  ;;  %954 = vmatpush.msrb.mxu1 %v919_v22 }
 0x1e5   : > { %1252 = vpow2.f32 %v780_v24  ;;  %969 = vmatpush.msra.mxu2 %v943_v44  ;;  %1160 = vmatpush.msra.mxu3 %v943_v44  ;;  %v935_v23 = vld [vmem:[%s2122_s8 + $0xb0] sm:$0xff]  ;;  %v918_v24 = vld [vmem:[%s2122_s8 + $0x28] sm:$0xff] }
 0x1e6   : > { %1146 = vmatmul.msk.f32.vlgmr.msra.gmra.mxu0 %vm475_vm0, %v1946_v25  ;;  %955 = vmatpush.msrb.mxu1 %v918_v24 }
 0x1e7   : > { %970 = vmatpush.msra.mxu2 %v942_v47  ;;  %1161 = vmatpush.msra.mxu3 %v942_v47 }
 0x1e8   : > { %956 = vmatpush.msrb.mxu1 %v917_v26 }
 0x1e9   : > { %971 = vmatpush.msra.mxu2 %v941_v50  ;;  %1162 = vmatpush.msra.mxu3 %v941_v50 }
 0x1eb   : > { %v1253_v27 = vpop.eup %1252  ;;  %972 = vmatpush.msra.mxu2 %v940_v53  ;;  %1163 = vmatpush.msra.mxu3 %v940_v53 }
 0x1ec   : > { %v1953_v28 = vmul.f32 %v1253_v27, %v466_v58  ;;  %v933_v27 = vld [vmem:[%s2122_s8 + $0xa0] sm:$0xff] }
 0x1ed   : > { %973 = vmatpush.msra.mxu2 %v939_v55  ;;  %1164 = vmatpush.msra.mxu3 %v939_v55 }
 0x1ee   : > { %1147 = vmatmul.msk.f32.gmra.mxu0 %vm475_vm0, %v1953_v28 }
 0x1ef   : > { %974 = vmatpush.msra.mxu2 %v938_v17  ;;  %1165 = vmatpush.msra.mxu3 %v938_v17 }
 0x1f1   : > { %975 = vmatpush.msra.mxu2 %v937_v19  ;;  %1166 = vmatpush.msra.mxu3 %v937_v19 }
 0x1f3   : > { %976 = vmatpush.msra.mxu2 %v936_v21  ;;  %1167 = vmatpush.msra.mxu3 %v936_v21 }
 0x1f5   : > { %977 = vmatpush.msra.mxu2 %v935_v23  ;;  %1168 = vmatpush.msra.mxu3 %v935_v23 }
 0x263   : > { %v811_v45 = vpop.f32.mrf.mxu0 }
 0x264   : > { %v817_v48 = vmax.f32 %v811_v45, 1e-30 }
 0x266   : > { %1254 = vrcp.f32 %v817_v48  ;;  %v830_v61 = vand.u32 2147483648, %v817_v48  ;;  %v828_v63 = vand.u32 2147483647, %v817_v48  ;;  %vm824_vm7 = vweird.f32 %v817_v48 }
 0x268   : > { %v831_v2 = vor.u32 1.1754944e-38, %v830_v61  ;;  %vm829_vm9 = vcmp.eq.f32.partialorder %v828_v63, 8.507059e+37 }
 0x26b   : > { %v814_v56 = vpop.f32.mrf.mxu0 }
 0x26c   : > { %v1255_v57 = vpop.eup %1254  ;;  %v818_v58 = vmax.f32 %v814_v56, 1e-30 }
 0x26d   : > { %v820_v59 = vmul.f32 %v1255_v57, %v817_v48  ;;  %vm825_vm6 = vweird.f32 %v1255_v57 }
 0x26e   : > { %1256 = vrcp.f32 %v818_v58  ;;  %vm826_vm8 = vmor %vm824_vm7, %vm825_vm6  ;;  %v844_v8 = vand.u32 2147483648, %v818_v58  ;;  %v842_v10 = vand.u32 2147483647, %v818_v58  ;;  %vm838_vm11 = vweird.f32 %v818_v58 }
 0x26f   : > { %v821_v60 = vsub.f32 1.0, %v820_v59 }
 0x270   : > { %v845_v12 = vor.u32 1.1754944e-38, %v844_v8  ;;  %vm843_vm13 = vcmp.eq.f32.partialorder %v842_v10, 8.507059e+37 }
 0x271   : > { %v822_v62 = vmul.f32 %v1255_v57, %v821_v60 }
 0x273   : > { %v823_v0 = vadd.f32 %v1255_v57, %v822_v62 }
 0x274   : > { %v1257_v1 = vpop.eup %1256 }
 0x275   : > { %v834_v3 = vmul.f32 %v1257_v1, %v818_v58  ;;  %v827_v4 = vsel %vm826_vm8, %v1255_v57, %v823_v0  ;;  %vm839_vm10 = vweird.f32 %v1257_v1 }
 0x276   : > { %v832_v5 = vsel %vm829_vm9, %v831_v2, %v827_v4  ;;  %vm840_vm12 = vmor %vm838_vm11, %vm839_vm10 }
 0x277   : > { %v835_v6 = vsub.f32 1.0, %v834_v3  ;;  %v847_v7 = vmul.f32 %v832_v5, %v1946_v25  ;;  %v934_v25 = vld [vmem:[%s2122_s8 + $0xa8] sm:$0xff] }
 0x278   : > { %978 = vmatpush.msra.mxu2 %v934_v25  ;;  %1169 = vmatpush.msra.mxu3 %v934_v25 }
 0x279   : > { %1148 = vmatmul.msk.f32.vlgmr.msra.gmra.mxu1 %vm475_vm0, %v847_v7  ;;  %1150 = vmatmul.msk.f32.vlgmr.msrb.gmra.mxu0 %vm475_vm0, %v847_v7  ;;  %v836_v9 = vmul.f32 %v1257_v1, %v835_v6 }
 0x27a   : > { %979 = vmatpush.msra.mxu2 %v933_v27  ;;  %1170 = vmatpush.msra.mxu3 %v933_v27 }
 0x27b   : > { %v837_v11 = vadd.f32 %v1257_v1, %v836_v9 }
 0x27c   : > { %980 = vmatpush.msra.mxu2 %v932_v29  ;;  %1171 = vmatpush.msra.mxu3 %v932_v29 }
 0x27d   : > { %v841_v13 = vsel %vm840_vm12, %v1257_v1, %v837_v11 }
 0x27e   : > { %v846_v14 = vsel %vm843_vm13, %v845_v12, %v841_v13  ;;  %981 = vmatpush.msra.mxu2 %v931_v31  ;;  %1172 = vmatpush.msra.mxu3 %v931_v31 }
 0x27f   : > { %v848_v15 = vmul.f32 %v846_v14, %v1953_v28  ;;  %v916_v28 = vld [vmem:[%s2122_s8 + $0x18] sm:$0xff] }
 0x280   : > { %957 = vmatpush.msrb.mxu1 %v916_v28  ;;  %982 = vmatpush.msra.mxu2 %v930_v34 }
 0x281   : > { %1149 = vmatmul.msk.f32.gmra.mxu1 %vm475_vm0, %v848_v15  ;;  %1151 = vmatmul.msk.f32.gmra.mxu0 %vm475_vm0, %v848_v15 }
 0x282   : > { %958 = vmatpush.msrb.mxu1 %v915_v30  ;;  %1173 = vmatpush.msra.mxu3 %v930_v34 }
 0x283   : > { %983 = vmatpush.msra.mxu2 %v929_v36 }
 0x284   : > { %959 = vmatpush.msrb.mxu1 %v914_v33  ;;  %1174 = vmatpush.msra.mxu3 %v929_v36 }
 0x286   : > { %960 = vmatpush.msrb.mxu1 %v913_v35 }
 0x2f6   : > { %v880_v39 = vpop.f32.mrf.mxu1  ;;  %v903_v40 = vpop.f32.mrf.mxu0 }
 0x2f7   : > { %v909_v51 = vmul.f32 %v880_v39, %v1967_v32  ;;  %v910_v41 = vmul.f32 %v903_v40, %v678_v37 }
 0x2f9   : > { %961 = vmatmul.f32.vlgmr.msrb.gmra.mxu1 %v909_v51  ;;  %984 = vmatmul.f32.vlgmr.msra.gmra.mxu2 %v910_v41 }
 0x2fe   : > { %v883_v43 = vpop.f32.mrf.mxu1  ;;  %v906_v44 = vpop.f32.mrf.mxu0 }
 0x2ff   : > { %v911_v45 = vmul.f32 %v883_v43, %v1970_v42  ;;  %v912_v46 = vmul.f32 %v906_v44, %v681_v38 }
 0x301   : > { %964 = vmatmul.f32.gmra.mxu1 %v911_v45  ;;  %987 = vmatmul.f32.vlgmr.msra.gmra.mxu3 %v912_v46 }
 0x376   : > { %v962_v47 = vpop.f32.mrf.mxu1 }
 0x37c   : > { %v985_v48 = vpop.f32.mrf.mxu2 }
 0x37d   : > { %v986_v49 = vadd.f32 %v985_v48, %v962_v47 }
 0x37e   : > { %v965_v32 = vpop.f32.mrf.mxu1 }
 0x37f   : > { %991 = vst.msk [vmem:[%s417_s20] sm:$0xff] %vm475_vm0, %v986_v49 }
 0x384   : > { %v988_v42 = vpop.f32.mrf.mxu3 }
 0x385   : > { %v989_v50 = vadd.f32 %v988_v42, %v965_v32 }
 0x387   : > { %992 = vst.msk [vmem:[%s417_s20 + $0x8] sm:$0xff] %vm475_vm0, %v989_v50 }
 0x388   : > { %1375 = shalt.err (!%p1372_p12)
}
 0x389   : > { %s1429_s25 = smov 128  }
 0x38a   : > { %1185 = dma.vmem_to_hbm [thread:$0]  (%p1552_p5), %s1007_s7, 256, %s1009_s6, %s994_s13, %s1429_s25, %s1429_s25, %s1426_s17  }
 0x38b PF: > { %s1023_s20 = sand.u32 1, %s1406_s30   ;;  %p2140_p13 = scmp.ge.s32.totalorder %s1418_s12, 2 }
 0x38c   : > { %s1024_s24 = scalar_lea.sflag [#allocation4], %s1023_s20 }
 0x38d   : > { %p1199_p0 = pnand %p2140_p13, %p1515_p6 }
 0x38f   : > { %p1200_p3 = pneg %p1199_p0 }
 0x391   : > { %1401 = dma.done.wait (%p1200_p3), %s1024_s24, 256  }
 0x392   : > { %1403 = vsyncadd (%p1200_p3), %s1024_s24, 4294967040  ;;  %s2141_s28 = sld [smem:[#allocation12_spill]]  ;;  %p23_p7 = scmp.ge.s32.totalorder %s1539_s18, 4  }
 0x393   : > { %s2142_s30 = smov %s1410_s10  ;;  %s2143_s10 = smov %s1414_s11 }
 0x394   : > { %s2145_s12 = smov %s1539_s18  ;;  %25 = sbr.rel (!%p23_p7) target bundleno = 9 (0x9), region = 115 }
 0x398   : > { %s2144_s11 = smov %s2141_s28 }
 0x399   :  { %1030 = vsyncpa [#allocation3], 1 }
 0x39a   :  { %1032 = vsyncpa [#allocation3 + $0x1], 1 }
 0x39b   :  { %1033 = vsyncpa [#allocation6], 1 }
 0x39c   :  { %1034 = vsyncpa [#allocation4], 1 }
 0x39d   :  { %1036 = vsyncpa [#allocation4 + $0x1], 1 }

</bundles_post_ra>
